<compile_context>
chip_gen: v7x
topology: tpu7x:2x2x1
jax: 0.10.0
libtpu: 0.0.40
codegen_flags: <defaults>
</compile_context>

<pallas_src>
import functools

import numpy as np
import jax
import jax.numpy as jnp
from jax.experimental import pallas as pl
from jax.experimental.pallas import tpu as pltpu


def _encoder_kernel(x_ref, w1_ref, b1_ref, wh_ref, bh_ref,
                    mean_ref, cvar_ref, *, z_dim):
    """One batch tile: [TB, 2] -> mean [TB, z_dim], cvariance [TB, z_dim]."""
    x = x_ref[...]                                   # [TB, 2] f32
    w1 = w1_ref[...]                                 # [2, H]  f32

    # fc1 on the VPU: K=2 contraction == two broadcast FMAs over [TB, H].
    h = (x[:, 0:1] * w1[0:1, :]
         + x[:, 1:2] * w1[1:2, :]
         + b1_ref[...])                              # [TB, H] f32

    # softplus (numerically stable: log(1 + exp(h)) == logaddexp(h, 0))
    h = jnp.logaddexp(h, 0.0)

    # Fused heads (fc21 || fc22), single MXU matmul.  Operands optionally bf16
    # (wh_ref dtype decides); accumulation stays f32.
    y = jnp.dot(h.astype(wh_ref.dtype), wh_ref[...],
                preferred_element_type=jnp.float32)  # [TB, OUT_PAD] f32
    y = y + bh_ref[...]

    # Narrow stores: only the useful z_dim columns hit HBM; exp only over the
    # cvariance columns.
    mean_ref[...] = y[:, :z_dim].astype(mean_ref.dtype)
    cvar_ref[...] = jnp.exp(y[:, z_dim:2 * z_dim]).astype(cvar_ref.dtype)


def _round_up(n, m):
    return ((n + m - 1) // m) * m


def _cdiv(a, b):
    return (a + b - 1) // b


def _choose_tb(B, H, tb_max):
    """Pick the batch tile: big tiles, >=2 grid steps when possible, small pad waste."""
    # Keep [TB, H] f32 intermediates around ~8 MiB so defaults fit comfortably
    # in scoped VMEM on all generations (v5e/v6e 32 MiB default, v7x 64 MiB phys).
    vmem_cap = max(512, (8 * 1024 * 1024) // (4 * max(H, 1)))
    tb_max = min(tb_max, _round_up(vmem_cap, 8))
    if B <= 16:
        return max(8, _round_up(B, 8))
    # Balanced split: at least 2 tiles (v7x 2-TC sharding), no tile above tb_max,
    # and B_pad - B stays small (< 16 rows for moderate B).
    n_tiles = max(2, _cdiv(B, tb_max))
    tb = _round_up(_cdiv(B, n_tiles), 8)
    return min(tb, tb_max)


def encoder_forward(x, params, *, tb_max=8192, use_bf16_matmul=True):
    """x: any shape reshapable to [-1, 2]. Returns (mean, cvariance), each [B, z_dim]."""
    x = jnp.asarray(x, jnp.float32).reshape(-1, 2)
    B = x.shape[0]

    w1, b1 = params["w1"], params["b1"]              # [2, H], [1, H]  (f32)
    wh, bh = params["w_heads"], params["b_heads"]    # [H, OUT_PAD], [1, OUT_PAD]
    z_dim = int(params["z_dim"])
    H = w1.shape[1]
    OUT_PAD = wh.shape[1]

    # MXU operands in bf16 (f32 accumulate) on request; everything else f32.
    wh_call = wh.astype(jnp.bfloat16) if use_bf16_matmul else wh

    TB = _choose_tb(B, H, tb_max)
    B_pad = _round_up(B, TB)
    if B_pad != B:
        x = jnp.pad(x, ((0, B_pad - B), (0, 0)))

    grid = (B_pad // TB,)

    mean, cvar = pl.pallas_call(
        functools.partial(_encoder_kernel, z_dim=z_dim),
        out_shape=(
            jax.ShapeDtypeStruct((B_pad, z_dim), jnp.float32),
            jax.ShapeDtypeStruct((B_pad, z_dim), jnp.float32),
        ),
        grid_spec=pltpu.PrefetchScalarGridSpec(
            num_scalar_prefetch=0,
            grid=grid,
            in_specs=[
                pl.BlockSpec((TB, 2), lambda i: (i, 0)),        # x rows, tiled
                pl.BlockSpec((2, H), lambda i: (0, 0)),         # w1 (VMEM-resident)
                pl.BlockSpec((1, H), lambda i: (0, 0)),         # b1
                pl.BlockSpec((H, OUT_PAD), lambda i: (0, 0)),   # fused head weight
                pl.BlockSpec((1, OUT_PAD), lambda i: (0, 0)),   # fused head bias
            ],
            out_specs=[
                pl.BlockSpec((TB, z_dim), lambda i: (i, 0)),    # mean (narrow store)
                pl.BlockSpec((TB, z_dim), lambda i: (i, 0)),    # cvariance
            ],
        ),
        compiler_params=pltpu.CompilerParams(
            dimension_semantics=("parallel",),
        ),
    )(x, w1, b1, wh_call, bh)

    return mean[:B], cvar[:B]


def init_params(key, z_dim, hidden_dim):
    """Synthetic init; weights stored [in, out]; head weights fused + lane-padded."""
    ks = jax.random.split(key, 6)
    s1 = 1.0 / np.sqrt(2.0)            # fan_in of fc1 is 2
    s2 = 1.0 / np.sqrt(hidden_dim)

    w1 = jax.random.uniform(ks[0], (2, hidden_dim), jnp.float32, -s1, s1)
    b1 = jax.random.uniform(ks[1], (1, hidden_dim), jnp.float32, -s1, s1)
    w21 = jax.random.uniform(ks[2], (hidden_dim, z_dim), jnp.float32, -s2, s2)
    b21 = jax.random.uniform(ks[3], (1, z_dim), jnp.float32, -s2, s2)
    w22 = jax.random.uniform(ks[4], (hidden_dim, z_dim), jnp.float32, -s2, s2)
    b22 = jax.random.uniform(ks[5], (1, z_dim), jnp.float32, -s2, s2)

    # Fuse the two heads into one matmul; pad only the MATMUL width to 128 lanes
    # (the stored outputs are narrow z_dim columns sliced inside the kernel).
    out_pad = max(128, _round_up(2 * z_dim, 128))
    w_heads = jnp.zeros((hidden_dim, out_pad), jnp.float32)
    w_heads = w_heads.at[:, :z_dim].set(w21).at[:, z_dim:2 * z_dim].set(w22)
    b_heads = jnp.zeros((1, out_pad), jnp.float32)
    b_heads = b_heads.at[:, :z_dim].set(b21).at[:, z_dim:2 * z_dim].set(b22)

    return {
        "w1": w1, "b1": b1,
        "w_heads": w_heads, "b_heads": b_heads,
        # unfused copies kept only for the pure-JAX reference
        "w21": w21, "b21": b21, "w22": w22, "b22": b22,
        "z_dim": z_dim,
    }


def encoder_ref(x, p):
    """Pure-JAX reference matching the PyTorch Encoder.forward."""
    x = jnp.asarray(x, jnp.float32).reshape(-1, 2)
    h = jax.nn.softplus(x @ p["w1"] + p["b1"])
    mean = h @ p["w21"] + p["b21"]
    cvariance = jnp.exp(h @ p["w22"] + p["b22"])
    return mean, cvariance


if __name__ == "__main__":
    key = jax.random.PRNGKey(0)
    k_param, k_x, k_x2 = jax.random.split(key, 3)

    Z_DIM = 2
    HIDDEN = 128           # multiple of 128 -> lane-full hidden activation
    params = init_params(k_param, Z_DIM, HIDDEN)

    # --- small deterministic example: x (8, 4) -> 16 rows of 2 features ---
    x = jax.random.normal(k_x, (8, 4), dtype=jnp.float32)
    mean_ref, cvar_ref = encoder_ref(x, params)

    # f32 MXU path (exact), tight tolerance.
    mean, cvar = encoder_forward(x, params, use_bf16_matmul=False)
    jax.block_until_ready((mean, cvar))
    np.testing.assert_allclose(np.asarray(mean), np.asarray(mean_ref),
                               rtol=1e-5, atol=1e-5)
    np.testing.assert_allclose(np.asarray(cvar), np.asarray(cvar_ref),
                               rtol=1e-5, atol=1e-5)

    # bf16 MXU-operand path (perf path on v6e/v7x), looser tolerance.
    mean_b, cvar_b = encoder_forward(x, params, use_bf16_matmul=True)
    jax.block_until_ready((mean_b, cvar_b))
    np.testing.assert_allclose(np.asarray(mean_b), np.asarray(mean_ref),
                               rtol=5e-2, atol=5e-2)
    np.testing.assert_allclose(np.asarray(cvar_b), np.asarray(cvar_ref),
                               rtol=5e-2, atol=5e-2)

    # --- medium batch: exercises multi-step grid, padding, parallel axis ---
    x2 = jax.random.normal(k_x2, (1000, 6), dtype=jnp.float32)   # -> 3000 rows
    mean2, cvar2 = encoder_forward(x2, params, use_bf16_matmul=False)
    jax.block_until_ready((mean2, cvar2))
    mean2_ref, cvar2_ref = encoder_ref(x2, params)
    np.testing.assert_allclose(np.asarray(mean2), np.asarray(mean2_ref),
                               rtol=1e-5, atol=1e-5)
    np.testing.assert_allclose(np.asarray(cvar2), np.asarray(cvar2_ref),
                               rtol=1e-5, atol=1e-5)

    B_rows = x.size // 2
    assert mean.shape == (B_rows, Z_DIM) and cvar.shape == (B_rows, Z_DIM)
    assert mean2.shape == (3000, Z_DIM) and cvar2.shape == (3000, Z_DIM)
    print("KERNEL_OK")
</pallas_src>

<mosaic_0001>
module attributes {stable_mosaic.version = 11 : i64} {
  func.func @_encoder_kernel(%arg0: i32, %arg1: memref<16x2xf32, #tpu.memory_space<vmem>>, %arg2: memref<2x128xf32, #tpu.memory_space<vmem>>, %arg3: memref<1x128xf32, #tpu.memory_space<vmem>>, %arg4: memref<128x128xf32, #tpu.memory_space<vmem>>, %arg5: memref<1x128xf32, #tpu.memory_space<vmem>>, %arg6: memref<16x2xf32, #tpu.memory_space<vmem>>, %arg7: memref<16x2xf32, #tpu.memory_space<vmem>>) attributes {dimension_semantics = [#tpu.dimension_semantics<parallel>], iteration_bounds = array<i64: 1>, scalar_prefetch = 0 : i64, scratch_operands = 0 : i64, tpu.core_type = #tpu.core_type<tc>, window_params = [{transform_indices = @transform_0, window_bounds = array<i64: 16, 2>}, {pipeline_mode = #tpu.pipeline_mode<synchronous>, transform_indices = @transform_1, window_bounds = array<i64: 2, 128>}, {pipeline_mode = #tpu.pipeline_mode<synchronous>, transform_indices = @transform_2, window_bounds = array<i64: 1, 128>}, {pipeline_mode = #tpu.pipeline_mode<synchronous>, transform_indices = @transform_3, window_bounds = array<i64: 128, 128>}, {pipeline_mode = #tpu.pipeline_mode<synchronous>, transform_indices = @transform_4, window_bounds = array<i64: 1, 128>}, {transform_indices = @transform_5, window_bounds = array<i64: 16, 2>}, {transform_indices = @transform_6, window_bounds = array<i64: 16, 2>}]} {
    %c0 = arith.constant 0 : index
    %c0_0 = arith.constant 0 : index
    %0 = vector.load %arg1[%c0, %c0_0] : memref<16x2xf32, #tpu.memory_space<vmem>>, vector<16x2xf32>
    %c0_1 = arith.constant 0 : index
    %c0_2 = arith.constant 0 : index
    %1 = vector.load %arg2[%c0_1, %c0_2] : memref<2x128xf32, #tpu.memory_space<vmem>>, vector<2x128xf32>
    %2 = vector.extract_strided_slice %0 {offsets = [0, 0], sizes = [16, 1], strides = [1, 1]} : vector<16x2xf32> to vector<16x1xf32>
    %3 = vector.extract_strided_slice %1 {offsets = [0, 0], sizes = [1, 128], strides = [1, 1]} : vector<2x128xf32> to vector<1x128xf32>
    %4 = vector.broadcast %2 : vector<16x1xf32> to vector<16x128xf32>
    %5 = vector.broadcast %3 : vector<1x128xf32> to vector<16x128xf32>
    %6 = arith.mulf %4, %5 : vector<16x128xf32>
    %7 = vector.extract_strided_slice %0 {offsets = [0, 1], sizes = [16, 1], strides = [1, 1]} : vector<16x2xf32> to vector<16x1xf32>
    %8 = vector.extract_strided_slice %1 {offsets = [1, 0], sizes = [1, 128], strides = [1, 1]} : vector<2x128xf32> to vector<1x128xf32>
    %9 = vector.broadcast %7 : vector<16x1xf32> to vector<16x128xf32>
    %10 = vector.broadcast %8 : vector<1x128xf32> to vector<16x128xf32>
    %11 = arith.mulf %9, %10 : vector<16x128xf32>
    %12 = arith.addf %6, %11 : vector<16x128xf32>
    %c0_3 = arith.constant 0 : index
    %c0_4 = arith.constant 0 : index
    %13 = vector.load %arg3[%c0_3, %c0_4] : memref<1x128xf32, #tpu.memory_space<vmem>>, vector<1x128xf32>
    %14 = vector.broadcast %13 : vector<1x128xf32> to vector<16x128xf32>
    %15 = arith.addf %12, %14 : vector<16x128xf32>
    %cst = arith.constant 0.000000e+00 : f32
    %16 = vector.broadcast %cst : f32 to vector<16x128xf32>
    %17 = arith.maximumf %15, %16 : vector<16x128xf32>
    %18 = vector.broadcast %cst : f32 to vector<16x128xf32>
    %19 = arith.subf %15, %18 : vector<16x128xf32>
    %20 = arith.cmpf one, %19, %19 : vector<16x128xf32>
    %21 = vector.broadcast %cst : f32 to vector<16x128xf32>
    %22 = arith.addf %15, %21 : vector<16x128xf32>
    %23 = math.absf %19 : vector<16x128xf32>
    %cst_5 = arith.constant 0.000000e+00 : f32
    %24 = vector.broadcast %cst_5 : f32 to vector<16x128xf32>
    %25 = arith.subf %24, %23 : vector<16x128xf32>
    %26 = math.exp %25 : vector<16x128xf32>
    %27 = math.log1p %26 : vector<16x128xf32>
    %28 = arith.addf %17, %27 : vector<16x128xf32>
    %29 = arith.select %20, %22, %28 : vector<16x128xi1>, vector<16x128xf32>
    %c0_6 = arith.constant 0 : index
    %c0_7 = arith.constant 0 : index
    %30 = vector.load %arg4[%c0_6, %c0_7] : memref<128x128xf32, #tpu.memory_space<vmem>>, vector<128x128xf32>
    %cst_8 = arith.constant dense<0.000000e+00> : vector<16x128xf32>
    %31 = tpu.matmul %29, %30, %cst_8 {dimension_numbers = #tpu.dot_dimension_numbers<[1], [0], [0], [1], [0, 0, 1, 1], [], []>} : vector<16x128xf32>, vector<128x128xf32>, vector<16x128xf32> -> vector<16x128xf32>
    %c0_9 = arith.constant 0 : index
    %c0_10 = arith.constant 0 : index
    %32 = vector.load %arg5[%c0_9, %c0_10] : memref<1x128xf32, #tpu.memory_space<vmem>>, vector<1x128xf32>
    %33 = vector.broadcast %32 : vector<1x128xf32> to vector<16x128xf32>
    %34 = arith.addf %31, %33 : vector<16x128xf32>
    %35 = vector.extract_strided_slice %34 {offsets = [0, 0], sizes = [16, 2], strides = [1, 1]} : vector<16x128xf32> to vector<16x2xf32>
    %c0_11 = arith.constant 0 : index
    %c0_12 = arith.constant 0 : index
    %36 = vector.load %arg6[%c0_11, %c0_12] : memref<16x2xf32, #tpu.memory_space<vmem>>, vector<16x2xf32>
    tpu.vector_store %arg6[%c0_11, %c0_12], %35 {strides = array<i32>} : memref<16x2xf32, #tpu.memory_space<vmem>>, vector<16x2xf32>,
    %37 = vector.extract_strided_slice %34 {offsets = [0, 2], sizes = [16, 2], strides = [1, 1]} : vector<16x128xf32> to vector<16x2xf32>
    %38 = math.exp %37 : vector<16x2xf32>
    %c0_13 = arith.constant 0 : index
    %c0_14 = arith.constant 0 : index
    %39 = vector.load %arg7[%c0_13, %c0_14] : memref<16x2xf32, #tpu.memory_space<vmem>>, vector<16x2xf32>
    tpu.vector_store %arg7[%c0_13, %c0_14], %38 {strides = array<i32>} : memref<16x2xf32, #tpu.memory_space<vmem>>, vector<16x2xf32>,
    return
  }
  func.func @transform_0(%arg0: i32) -> (i32, i32) {
    %c0_i32 = arith.constant 0 : i32
    %c0_i32_0 = arith.constant 0 : i32
    return %arg0, %c0_i32 : i32, i32
  }
  func.func @transform_1(%arg0: i32) -> (i32, i32) {
    %c0_i32 = arith.constant 0 : i32
    %c0_i32_0 = arith.constant 0 : i32
    %c0_i32_1 = arith.constant 0 : i32
    return %c0_i32, %c0_i32_0 : i32, i32
  }
  func.func @transform_2(%arg0: i32) -> (i32, i32) {
    %c0_i32 = arith.constant 0 : i32
    %c0_i32_0 = arith.constant 0 : i32
    %c0_i32_1 = arith.constant 0 : i32
    return %c0_i32, %c0_i32_0 : i32, i32
  }
  func.func @transform_3(%arg0: i32) -> (i32, i32) {
    %c0_i32 = arith.constant 0 : i32
    %c0_i32_0 = arith.constant 0 : i32
    %c0_i32_1 = arith.constant 0 : i32
    return %c0_i32, %c0_i32_0 : i32, i32
  }
  func.func @transform_4(%arg0: i32) -> (i32, i32) {
    %c0_i32 = arith.constant 0 : i32
    %c0_i32_0 = arith.constant 0 : i32
    %c0_i32_1 = arith.constant 0 : i32
    return %c0_i32, %c0_i32_0 : i32, i32
  }
  func.func @transform_5(%arg0: i32) -> (i32, i32) {
    %c0_i32 = arith.constant 0 : i32
    %c0_i32_0 = arith.constant 0 : i32
    return %arg0, %c0_i32 : i32, i32
  }
  func.func @transform_6(%arg0: i32) -> (i32, i32) {
    %c0_i32 = arith.constant 0 : i32
    %c0_i32_0 = arith.constant 0 : i32
    return %arg0, %c0_i32 : i32, i32
  }
}

</mosaic_0001>

<bundles_post_ra>
// kernel: tpu_custom_call.1
= control target key start
LH: loop header
LB: loop body
LE: loop exit
PB: predicated region body
PF: predicated region fallthrough
CT: control target
= control target key end

     0   :  { %12 = vsyncpa [#allocation3], 0  ;;  %s373_s21 = smov [#allocation2]   ;;  %s457_s0 = inlined_call_operand.vmem [shape: f32[16,2], index: 0, kind: input, shape index: {}]   ;;  %s458_s1 = inlined_call_operand.vmem [shape: f32[2,128], index: 1, kind: input, shape index: {}]   ;;  %s459_s2 = inlined_call_operand.vmem [shape: f32[1,128], index: 2, kind: input, shape index: {}]   ;;  %s460_s3 = inlined_call_operand.hbm [shape: f32[128,128], index: 3, kind: input, shape index: {}]   ;;  %s461_s4 = inlined_call_operand.vmem [shape: f32[1,128], index: 4, kind: input, shape index: {}]   ;;  %s462_s5 = inlined_call_operand.vmem [shape: f32[16,2], index: 5, kind: output, shape index: {0}]   ;;  %s463_s6 = inlined_call_operand.vmem [shape: f32[16,2], index: 6, kind: output, shape index: {1}]  }
   0x1   :  { %s24_s22 = sshll.u32 %s373_s21, 4  ;;  %s349_s25 = scalar_lea.hbm %s460_s3, 2048  ;;  %s25_s22 = int_to_ptr.vmem [resolvable:$true] %s24_s22 }
   0x2   :  { %p350_p0 = scmp.ne.s32.totalorder %s460_s3, %s349_s25  ;;  %p353_p1 = scmp.lt.u32.totalorder %s349_s25, %s460_s3 }
   0x4   :  { %p355_p2 = pnand %p353_p1, %p350_p0 }
   0x6   :  { %358 = shalt.err (!%p355_p2)
}
   0x7   :  { %s359_s30 = scalar_lea.vmem %s25_s22, 2048  ;;  %p364_p4 = scmp.lt.s32.totalorder %s25_s22, %s25_s22 }
   0x8   :  { %p360_p3 = scmp.ne.s32.totalorder %s25_s22, %s359_s30  ;;  %p365_p5 = scmp.lt.s32.totalorder %s359_s30, %s359_s30 }
   0xa   :  { %p366_p6 = por %p365_p5, %p364_p4 }
   0xc   :  { %p367_p7 = pnand %p366_p6, %p360_p3 }
   0xe   :  { %370 = shalt.err (!%p367_p7)
}
   0xf   :  { %s374_s7 = smov 128   ;;  %s375_s8 = smov 8  }
  0x10   :  { %30 = dma.hbm_to_vmem [thread:$0]  %s460_s3, 2048, %s25_s22, [#allocation3], %s374_s7, %s374_s7, %s375_s8  }
  0x11   :  { %371 = dma.done.wait [#allocation3], 2048  }
  0x12   :  { %372 = vsyncadd [#allocation3], 4294965248  ;;  %v376_v0 = vmov 0   ;;  %v37_v1 = vld [vmem:[%s457_s0 + $0x8] sm:$0xff]  ;;  %v36_v2 = vld [vmem:[%s457_s0] sm:$0xff]  ;;  %v377_v3 = vmov 1   ;;  %v49_v28 = vlaneseq }
  0x13   :  { %335 = vset.pattern.permute.xlu1 %v376_v0  ;;  %333 = vset.pattern.permute.xlu0 %v376_v0  ;;  %v116_v4 = vld [vmem:[#allocation2] sm:$0xff]  ;;  %v117_v5 = vld [vmem:[#allocation2 + $0x8] sm:$0xff]  ;;  %v118_v7 = vld [vmem:[#allocation2 + $0x10] sm:$0xff]  ;;  %vm214_vm4 = vcmask 15360  }
  0x14   :  { %46 = vperm.xlu1 %335, %v37_v1   ;;  %41 = vperm.xlu0 %333, %v36_v2   ;;  %v295_v6 = vpack.c.bf16 %v117_v5, %v116_v4  ;;  %v119_v8 = vld [vmem:[#allocation2 + $0x18] sm:$0xff]  ;;  %v120_v9 = vld [vmem:[#allocation2 + $0x20] sm:$0xff]  ;;  %v121_v11 = vld [vmem:[#allocation2 + $0x28] sm:$0xff]  ;;  %v50_v29 = vshrl.u32 %v49_v28, 7 }
  0x15   :  { %v299_v10 = vpack.c.bf16 %v119_v8, %v118_v7  ;;  %v303_v12 = vpack.c.bf16 %v121_v11, %v120_v9  ;;  %v122_v13 = vld [vmem:[#allocation2 + $0x30] sm:$0xff]  ;;  %v123_v14 = vld [vmem:[#allocation2 + $0x38] sm:$0xff]  ;;  %v124_v16 = vld [vmem:[#allocation2 + $0x40] sm:$0xff] }
  0x16   :  { %296 = vmatprep.subr.bf16.mxu0 %v295_v6  ;;  %v307_v15 = vpack.c.bf16 %v123_v14, %v122_v13  ;;  %v125_v17 = vld [vmem:[#allocation2 + $0x48] sm:$0xff]  ;;  %v126_v19 = vld [vmem:[#allocation2 + $0x50] sm:$0xff]  ;;  %v127_v20 = vld [vmem:[#allocation2 + $0x58] sm:$0xff]  ;;  %v51_v30 = vsub.s32 0, %v50_v29  ;;  %v65_v31 = vsub.s32 1, %v50_v29 }
  0x17   :  { %298 = vmatpush3.bf16.msra.mxu0 %v295_v6  ;;  %v311_v18 = vpack.c.bf16 %v125_v17, %v124_v16  ;;  %v315_v21 = vpack.c.bf16 %v127_v20, %v126_v19  ;;  %v128_v22 = vld [vmem:[#allocation2 + $0x60] sm:$0xff]  ;;  %v129_v23 = vld [vmem:[#allocation2 + $0x68] sm:$0xff]  ;;  %v130_v25 = vld [vmem:[#allocation2 + $0x70] sm:$0xff] }
  0x18   :  { %336 = vset.pattern.permute.xlu1 %v377_v3  ;;  %334 = vset.pattern.permute.xlu0 %v377_v3  ;;  %v319_v24 = vpack.c.bf16 %v129_v23, %v128_v22  ;;  %v131_v26 = vld [vmem:[#allocation2 + $0x78] sm:$0xff]  ;;  %v38_v32 = vld [vmem:[%s458_s1] sm:$0x3] }
  0x19   :  { %60 = vperm.xlu1 %336, %v37_v1   ;;  %56 = vperm.xlu0 %334, %v36_v2   ;;  %v323_v27 = vpack.c.bf16 %v131_v26, %v130_v25  ;;  %v52_v35 = vrot.slane %v38_v32, %v51_v30  ;;  %v66_v36 = vrot.slane %v38_v32, %v65_v31  ;;  %v240_v43 = vld [vmem:[%s459_s2] ss:$0 sm:$0xff] }
  0x1a   :  { %300 = vmatprep.subr.bf16.mxu0 %v299_v10  ;;  %v241_v14 = vld [vmem:[%s461_s4] ss:$0 sm:$0xff]  ;;  %s378_s4 = smov 126  }
  0x1b   :  { %302 = vmatpush3.bf16.msra.mxu0 %v299_v10 }
  0x1c   :  { %304 = vmatprep.subr.bf16.mxu0 %v303_v12 }
  0x1f   :  { %306 = vmatpush3.bf16.msra.mxu0 %v303_v12 }
  0x20   :  { %308 = vmatprep.subr.bf16.mxu0 %v307_v15 }
  0x23   :  { %310 = vmatpush3.bf16.msra.mxu0 %v307_v15 }
  0x24   :  { %312 = vmatprep.subr.bf16.mxu0 %v311_v18 }
  0x27   :  { %314 = vmatpush3.bf16.msra.mxu0 %v311_v18 }
  0x28   :  { %316 = vmatprep.subr.bf16.mxu0 %v315_v21 }
  0x2b   :  { %318 = vmatpush3.bf16.msra.mxu0 %v315_v21 }
  0x2c   :  { %320 = vmatprep.subr.bf16.mxu0 %v319_v24 }
  0x2f   :  { %322 = vmatpush3.bf16.msra.mxu0 %v319_v24 }
  0x30   :  { %324 = vmatprep.subr.bf16.mxu0 %v323_v27 }
  0x33   :  { %326 = vmatpush3.bf16.msra.mxu0 %v323_v27 }
  0x93   :  { %v42_v33 = vpop.permute.xlu0 %41  ;;  %v47_v34 = vpop.permute.xlu1 %46 }
  0x94   :  { %v53_v39 = vmul.f32 %v52_v35, %v42_v33  ;;  %v54_v40 = vmul.f32 %v52_v35, %v47_v34 }
  0x98   :  { %v61_v37 = vpop.permute.xlu1 %60  ;;  %v57_v38 = vpop.permute.xlu0 %56 }
  0x99   :  { %v68_v41 = vmul.f32 %v66_v36, %v61_v37  ;;  %v67_v42 = vmul.f32 %v66_v36, %v57_v38 }
  0x9b   :  { %v70_v44 = vadd.f32 %v68_v41, %v54_v40  ;;  %v69_v45 = vadd.f32 %v67_v42, %v53_v39 }
  0x9d   :  { %v79_v46 = vadd.f32 %v240_v43, %v70_v44  ;;  %v78_v47 = vadd.f32 %v240_v43, %v69_v45 }
  0x9f   :  { %v87_v48 = vand.u32 2147483647, %v79_v46  ;;  %v86_v49 = vand.u32 2147483647, %v78_v47  ;;  %v81_v6 = vmax.f32 %v79_v46, 0.0  ;;  %v80_v7 = vmax.f32 %v78_v47, 0.0 }
  0xa0   :  { %vm83_vm2 = vcmp.ne.f32.partialorder %v79_v46, %v79_v46  ;;  %vm82_vm3 = vcmp.ne.f32.partialorder %v78_v47, %v78_v47 }
  0xa1   :  { %v89_v50 = vsub.f32 0.0, %v87_v48  ;;  %v88_v51 = vsub.f32 0.0, %v86_v49 }
  0xa3   :  { %v92_v52 = vmul.f32 1.442695, %v89_v50  ;;  %v90_v53 = vmul.f32 1.442695, %v88_v51 }
  0xa5   :  { %337 = vpow2.f32 %v92_v52 }
  0xa6   :  { %339 = vpow2.f32 %v90_v53 }
  0xaf   :  { %v338_v54 = vpop.eup %337 }
  0xb0   :  { %v340_v55 = vpop.eup %339  ;;  %v103_v56 = vadd.f32 1.0, %v338_v54  ;;  %v106_v58 = vmul.f32 -0.5, %v338_v54  ;;  %v109_v62 = vand.u32 2147483647, %v338_v54 }
  0xb1   :  { %v94_v57 = vadd.f32 1.0, %v340_v55  ;;  %v97_v59 = vmul.f32 -0.5, %v340_v55  ;;  %v100_v63 = vand.u32 2147483647, %v340_v55 }
  0xb2   :  { %341 = vlog2.f32 %v103_v56  ;;  %v107_v60 = vadd.f32 1.0, %v106_v58  ;;  %vm110_vm0 = vcmp.lt.f32.partialorder %v109_v62, 0.0004427343 }
  0xb3   :  { %343 = vlog2.f32 %v94_v57  ;;  %v98_v61 = vadd.f32 1.0, %v97_v59  ;;  %vm101_vm1 = vcmp.lt.f32.partialorder %v100_v63, 0.0004427343 }
  0xb4   :  { %v108_v3 = vmul.f32 %v338_v54, %v107_v60 }
  0xb5   :  { %v99_v5 = vmul.f32 %v340_v55, %v98_v61 }
  0xbc   :  { %v342_v0 = vpop.eup %341 }
  0xbd   :  { %v344_v1 = vpop.eup %343  ;;  %v105_v2 = vmul.f32 0.6931472, %v342_v0 }
  0xbe   :  { %v96_v4 = vmul.f32 0.6931472, %v344_v1 }
  0xbf   :  { %v111_v8 = vsel %vm110_vm0, %v108_v3, %v105_v2 }
  0xc0   :  { %v102_v9 = vsel %vm101_vm1, %v99_v5, %v96_v4  ;;  %v113_v10 = vadd.f32 %v111_v8, %v81_v6 }
  0xc1   :  { %v112_v11 = vadd.f32 %v102_v9, %v80_v7 }
  0xc2   :  { %v115_v12 = vsel %vm83_vm2, %v79_v46, %v113_v10 }
  0xc3   :  { %v114_v13 = vsel %vm82_vm3, %v78_v47, %v112_v11 }
  0xc4   :  { %292 = vmatprep.mubr.f32.mxu0 %v114_v13 }
  0xc5   :  { %293 = vmatmul.mubr.f32.vlgmr.msra.gmra.mrb[0].mxu0 %v115_v12 }
 0x198   :  { %v294_v15 = vpop.f32.mrb[0].mxu0 }
 0x199   :  { %v211_v16 = vadd.f32 %v294_v15, %v241_v14  ;;  %v205_v17 = vpop.f32.mrb[1].mxu0 }
 0x19a   :  { %v206_v18 = vadd.f32 %v241_v14, %v205_v17 }
 0x19b   :  { %216 = vst.msk [vmem:[%s462_s5 + $0x8] sm:$0xff] %vm214_vm4, %v211_v16  ;;  %v219_v19 = vmul.f32 1.442695, %v211_v16 }
 0x19c   :  { %215 = vst.msk [vmem:[%s462_s5] sm:$0xff] %vm214_vm4, %v206_v18  ;;  %v217_v20 = vmul.f32 1.442695, %v206_v18 }
 0x19d   :  { %345 = vpow2.f32 %v219_v19 }
 0x19e   :  { %347 = vpow2.f32 %v217_v20 }
 0x1a7   :  { %v346_v21 = vpop.eup %345 }
 0x1a8   :  { %v348_v22 = vpop.eup %347  ;;  %225 = vrot.lane.b32.xlu0 %v346_v21, %s378_s4 }
 0x1a9   :  { %223 = vrot.lane.b32.xlu1 %v348_v22, %s378_s4 }
 0x21a   :  { %v226_v23 = vpop.permute.xlu0 %225 }
 0x21b   :  { %230 = vst.msk [vmem:[%s463_s6 + $0x8] sm:$0xff] %vm214_vm4, %v226_v23  ;;  %v224_v24 = vpop.permute.xlu1 %223 }
 0x21c   :  { %229 = vst.msk [vmem:[%s463_s6] sm:$0xff] %vm214_vm4, %v224_v24 }
 0x21d   :  { %239 = vsyncpa [#allocation3], 1 }

</bundles_post_ra>
